<compile_context>
chip_gen: v6e
topology: v6e:2x2x1
jax: 0.10.0
libtpu: 0.0.40
codegen_flags: <defaults>
</compile_context>

<pallas_src>
import jax
import jax.numpy as jnp
from jax.experimental import pallas as pl
from jax.experimental.pallas import tpu as pltpu


def _round_up(x, m):
    return (x + m - 1) // m * m


# ---------------------------------------------------------------------------
# Pallas kernel: tiled  out = A @ B + bias   (bf16 MXU inputs, f32 accumulate)
# ---------------------------------------------------------------------------
def _matmul_bias_kernel(a_ref, b_ref, bias_ref, o_ref, acc_ref):
    k = pl.program_id(2)

    @pl.when(k == 0)
    def _():
        acc_ref[...] = jnp.zeros_like(acc_ref)

    acc_ref[...] += jnp.dot(
        a_ref[...], b_ref[...], preferred_element_type=jnp.float32
    )

    # Bias is added exactly once, on the final k step (epilogue off the
    # reduction critical path); output store is lane-dense (tn % 128 == 0).
    @pl.when(k == pl.num_programs(2) - 1)
    def _():
        o_ref[...] = (acc_ref[...] + bias_ref[...]).astype(o_ref.dtype)


def pallas_matmul_bias(a, b, bias=None, *, max_tm=256, max_tn=256, max_tk=512):
    """out = a @ b + bias, tiled. a:(M,K) b:(K,N) bias:(N,) -> (M,N) f32."""
    m, k = a.shape
    k2, n = b.shape
    assert k == k2
    if bias is None:
        bias = jnp.zeros((n,), jnp.float32)

    # Tile sizes: MXU/lane aligned, capped so double-buffered tiles stay well
    # under the scoped-VMEM limit on every generation (incl. 64 MiB v7x).
    tm = min(max_tm, _round_up(m, 128))
    tn = min(max_tn, _round_up(n, 128))
    tk = min(max_tk, _round_up(k, 128))
    mp = _round_up(m, tm)
    np_ = _round_up(n, tn)
    kp = _round_up(k, tk)

    # Pad to tile multiples; MXU inputs in bf16, bias/accumulator in f32.
    a_p = jnp.pad(a.astype(jnp.bfloat16), ((0, mp - m), (0, kp - k)))
    b_p = jnp.pad(b.astype(jnp.bfloat16), ((0, kp - k), (0, np_ - n)))
    bias_p = jnp.pad(bias.astype(jnp.float32), (0, np_ - n)).reshape(1, np_)

    grid = (mp // tm, np_ // tn, kp // tk)

    cost = pl.CostEstimate(
        flops=2 * mp * np_ * kp,
        transcendentals=0,
        bytes_accessed=(mp * kp + kp * np_) * 2 + mp * np_ * 4 + np_ * 4,
    )

    out_p = pl.pallas_call(
        _matmul_bias_kernel,
        out_shape=jax.ShapeDtypeStruct((mp, np_), jnp.float32),
        grid_spec=pltpu.PrefetchScalarGridSpec(
            num_scalar_prefetch=0,
            grid=grid,
            in_specs=[
                pl.BlockSpec((tm, tk), lambda i, j, kk: (i, kk)),
                pl.BlockSpec((tk, tn), lambda i, j, kk: (kk, j)),
                pl.BlockSpec((1, tn), lambda i, j, kk: (0, j)),
            ],
            out_specs=pl.BlockSpec((tm, tn), lambda i, j, kk: (i, j)),
            scratch_shapes=[pltpu.VMEM((tm, tn), jnp.float32)],
        ),
        compiler_params=pltpu.CompilerParams(
            dimension_semantics=("parallel", "parallel", "arbitrary"),
        ),
        cost_estimate=cost,
    )(a_p, b_p, bias_p)

    return out_p[:m, :n]


# ---------------------------------------------------------------------------
# One GCNConv layer = two tiled passes:  XW = X @ W ; out = A_hat @ XW + b
# (PyG adds the bias after aggregation, so it must not be folded into XW.)
# ---------------------------------------------------------------------------
def gcn_layer(a_hat, x, w, b):
    xw = pallas_matmul_bias(x, w)
    return pallas_matmul_bias(a_hat, xw, b)


# ---------------------------------------------------------------------------
# Glue: symmetric-normalized dense adjacency from edge_index (PyG gcn_norm)
# ---------------------------------------------------------------------------
def build_normalized_adjacency(edge_index, num_nodes):
    src = edge_index[0]
    dst = edge_index[1]
    adj = jnp.zeros((num_nodes, num_nodes), jnp.float32)
    adj = adj.at[dst, src].add(1.0)                 # A[dst, src] += 1
    adj = adj + jnp.eye(num_nodes, dtype=jnp.float32)  # self loops
    deg = adj.sum(axis=1)
    deg_inv_sqrt = jnp.where(deg > 0, 1.0 / jnp.sqrt(deg), 0.0)
    return deg_inv_sqrt[:, None] * adj * deg_inv_sqrt[None, :]


# ---------------------------------------------------------------------------
# GCN module: conv1(in -> 200) then conv2(200 -> out), no activation between
# (matches the reference forward; the dropout attribute is unused in forward)
# ---------------------------------------------------------------------------
def init_gcn_params(key, in_channels, out_channels, hidden=200):
    k1, k2 = jax.random.split(key)
    w1 = jax.random.normal(k1, (in_channels, hidden), jnp.float32) * (
        1.0 / jnp.sqrt(jnp.float32(in_channels))
    )
    b1 = jnp.zeros((hidden,), jnp.float32)
    w2 = jax.random.normal(k2, (hidden, out_channels), jnp.float32) * (
        1.0 / jnp.sqrt(jnp.float32(hidden))
    )
    b2 = jnp.zeros((out_channels,), jnp.float32)
    return {"w1": w1, "b1": b1, "w2": w2, "b2": b2}


@jax.jit
def gcn_forward(params, x, a_hat):
    h = gcn_layer(a_hat, x, params["w1"], params["b1"])
    out = gcn_layer(a_hat, h, params["w2"], params["b2"])
    return out


if __name__ == "__main__":
    key = jax.random.PRNGKey(0)
    k_x, k_e, k_p = jax.random.split(key, 3)

    num_nodes = 16
    in_channels = 8
    out_channels = 4
    num_edges = 40

    x = jax.random.normal(k_x, (num_nodes, in_channels), jnp.float32)
    pos_edge_index = jax.random.randint(
        k_e, (2, num_edges), 0, num_nodes, dtype=jnp.int32
    )

    params = init_gcn_params(k_p, in_channels, out_channels)
    a_hat = build_normalized_adjacency(pos_edge_index, num_nodes)

    out = gcn_forward(params, x, a_hat)
    jax.block_until_ready(out)

    # Pure-JAX reference with the identical bf16-input / f32-accumulate math.
    def ref_mm(a, b, bias=None):
        r = jnp.dot(
            a.astype(jnp.bfloat16),
            b.astype(jnp.bfloat16),
            preferred_element_type=jnp.float32,
        )
        return r if bias is None else r + bias

    h_ref = ref_mm(a_hat, ref_mm(x, params["w1"]), params["b1"])
    ref = ref_mm(a_hat, ref_mm(h_ref, params["w2"]), params["b2"])

    assert out.shape == (num_nodes, out_channels)
    assert jnp.allclose(out, ref, atol=1e-3, rtol=1e-3)

    print("KERNEL_OK")
</pallas_src>

<mosaic_0001>
module attributes {stable_mosaic.version = 11 : i64} {
  func.func @_matmul_bias_kernel(%arg0: i32, %arg1: i32, %arg2: i32, %arg3: memref<128x256xbf16, #tpu.memory_space<vmem>>, %arg4: memref<256x128xbf16, #tpu.memory_space<vmem>>, %arg5: memref<1x128xf32, #tpu.memory_space<vmem>>, %arg6: memref<128x128xf32, #tpu.memory_space<vmem>>, %arg7: memref<128x128xf32, #tpu.memory_space<vmem>>) attributes {dimension_semantics = [#tpu.dimension_semantics<parallel>, #tpu.dimension_semantics<parallel>, #tpu.dimension_semantics<arbitrary>], iteration_bounds = array<i64: 1, 1, 1>, scalar_prefetch = 0 : i64, scratch_operands = 1 : i64, tpu.core_type = #tpu.core_type<tc>, window_params = [{transform_indices = @transform_0, window_bounds = array<i64: 128, 256>}, {transform_indices = @transform_1, window_bounds = array<i64: 256, 128>}, {transform_indices = @transform_2, window_bounds = array<i64: 1, 128>}, {transform_indices = @transform_3, window_bounds = array<i64: 128, 128>}]} {
    %c0_i32 = arith.constant 0 : i32
    %0 = arith.cmpi eq, %arg2, %c0_i32 : i32
    %1 = arith.extui %0 : i1 to i32
    %c0_i32_0 = arith.constant 0 : i32
    %2 = arith.cmpi ne, %1, %c0_i32_0 : i32
    scf.if %2 {
      %cst_10 = arith.constant 0.000000e+00 : f32
      %12 = vector.broadcast %cst_10 : f32 to vector<128x128xf32>
      %c0_11 = arith.constant 0 : index
      %c0_12 = arith.constant 0 : index
      %13 = vector.load %arg7[%c0_11, %c0_12] : memref<128x128xf32, #tpu.memory_space<vmem>>, vector<128x128xf32>
      tpu.vector_store %arg7[%c0_11, %c0_12], %12 {strides = array<i32>} : memref<128x128xf32, #tpu.memory_space<vmem>>, vector<128x128xf32>,
    } else {
    }
    %c0 = arith.constant 0 : index
    %c0_1 = arith.constant 0 : index
    %3 = vector.load %arg7[%c0, %c0_1] : memref<128x128xf32, #tpu.memory_space<vmem>>, vector<128x128xf32>
    %c0_2 = arith.constant 0 : index
    %c0_3 = arith.constant 0 : index
    %4 = vector.load %arg3[%c0_2, %c0_3] : memref<128x256xbf16, #tpu.memory_space<vmem>>, vector<128x256xbf16>
    %c0_4 = arith.constant 0 : index
    %c0_5 = arith.constant 0 : index
    %5 = vector.load %arg4[%c0_4, %c0_5] : memref<256x128xbf16, #tpu.memory_space<vmem>>, vector<256x128xbf16>
    %cst = arith.constant dense<0.000000e+00> : vector<128x128xf32>
    %6 = tpu.matmul %4, %5, %cst {dimension_numbers = #tpu.dot_dimension_numbers<[1], [0], [0], [1], [0, 0, 1, 1], [], []>} : vector<128x256xbf16>, vector<256x128xbf16>, vector<128x128xf32> -> vector<128x128xf32>
    %7 = arith.addf %3, %6 : vector<128x128xf32>
    %c0_6 = arith.constant 0 : index
    %c0_7 = arith.constant 0 : index
    %8 = vector.load %arg7[%c0_6, %c0_7] : memref<128x128xf32, #tpu.memory_space<vmem>>, vector<128x128xf32>
    tpu.vector_store %arg7[%c0_6, %c0_7], %7 {strides = array<i32>} : memref<128x128xf32, #tpu.memory_space<vmem>>, vector<128x128xf32>,
    %c0_i32_8 = arith.constant 0 : i32
    %9 = arith.cmpi eq, %arg2, %c0_i32_8 : i32
    %10 = arith.extui %9 : i1 to i32
    %c0_i32_9 = arith.constant 0 : i32
    %11 = arith.cmpi ne, %10, %c0_i32_9 : i32
    scf.if %11 {
      %c0_10 = arith.constant 0 : index
      %c0_11 = arith.constant 0 : index
      %12 = vector.load %arg7[%c0_10, %c0_11] : memref<128x128xf32, #tpu.memory_space<vmem>>, vector<128x128xf32>
      %c0_12 = arith.constant 0 : index
      %c0_13 = arith.constant 0 : index
      %13 = vector.load %arg5[%c0_12, %c0_13] : memref<1x128xf32, #tpu.memory_space<vmem>>, vector<1x128xf32>
      %14 = vector.broadcast %13 : vector<1x128xf32> to vector<128x128xf32>
      %15 = arith.addf %12, %14 : vector<128x128xf32>
      %c0_14 = arith.constant 0 : index
      %c0_15 = arith.constant 0 : index
      %16 = vector.load %arg6[%c0_14, %c0_15] : memref<128x128xf32, #tpu.memory_space<vmem>>, vector<128x128xf32>
      tpu.vector_store %arg6[%c0_14, %c0_15], %15 {strides = array<i32>} : memref<128x128xf32, #tpu.memory_space<vmem>>, vector<128x128xf32>,
    } else {
    }
    return
  }
  func.func @transform_0(%arg0: i32, %arg1: i32, %arg2: i32) -> (i32, i32) {
    %c0_i32 = arith.constant 0 : i32
    return %arg0, %arg2 : i32, i32
  }
  func.func @transform_1(%arg0: i32, %arg1: i32, %arg2: i32) -> (i32, i32) {
    %c0_i32 = arith.constant 0 : i32
    return %arg2, %arg1 : i32, i32
  }
  func.func @transform_2(%arg0: i32, %arg1: i32, %arg2: i32) -> (i32, i32) {
    %c0_i32 = arith.constant 0 : i32
    %c0_i32_0 = arith.constant 0 : i32
    return %c0_i32, %arg1 : i32, i32
  }
  func.func @transform_3(%arg0: i32, %arg1: i32, %arg2: i32) -> (i32, i32) {
    %c0_i32 = arith.constant 0 : i32
    return %arg0, %arg1 : i32, i32
  }
}

module attributes {stable_mosaic.version = 11 : i64} {
  func.func @_matmul_bias_kernel(%arg0: i32, %arg1: i32, %arg2: i32, %arg3: memref<128x128xbf16, #tpu.memory_space<vmem>>, %arg4: memref<128x256xbf16, #tpu.memory_space<vmem>>, %arg5: memref<1x256xf32, #tpu.memory_space<vmem>>, %arg6: memref<128x256xf32, #tpu.memory_space<vmem>>, %arg7: memref<128x256xf32, #tpu.memory_space<vmem>>) attributes {dimension_semantics = [#tpu.dimension_semantics<parallel>, #tpu.dimension_semantics<parallel>, #tpu.dimension_semantics<arbitrary>], iteration_bounds = array<i64: 1, 1, 1>, scalar_prefetch = 0 : i64, scratch_operands = 1 : i64, tpu.core_type = #tpu.core_type<tc>, window_params = [{transform_indices = @transform_0, window_bounds = array<i64: 128, 128>}, {transform_indices = @transform_1, window_bounds = array<i64: 128, 256>}, {transform_indices = @transform_2, window_bounds = array<i64: 1, 256>}, {transform_indices = @transform_3, window_bounds = array<i64: 128, 256>}]} {
    %c0_i32 = arith.constant 0 : i32
    %0 = arith.cmpi eq, %arg2, %c0_i32 : i32
    %1 = arith.extui %0 : i1 to i32
    %c0_i32_0 = arith.constant 0 : i32
    %2 = arith.cmpi ne, %1, %c0_i32_0 : i32
    scf.if %2 {
      %cst_10 = arith.constant 0.000000e+00 : f32
      %12 = vector.broadcast %cst_10 : f32 to vector<128x256xf32>
      %c0_11 = arith.constant 0 : index
      %c0_12 = arith.constant 0 : index
      %13 = vector.load %arg7[%c0_11, %c0_12] : memref<128x256xf32, #tpu.memory_space<vmem>>, vector<128x256xf32>
      tpu.vector_store %arg7[%c0_11, %c0_12], %12 {strides = array<i32>} : memref<128x256xf32, #tpu.memory_space<vmem>>, vector<128x256xf32>,
    } else {
    }
    %c0 = arith.constant 0 : index
    %c0_1 = arith.constant 0 : index
    %3 = vector.load %arg7[%c0, %c0_1] : memref<128x256xf32, #tpu.memory_space<vmem>>, vector<128x256xf32>
    %c0_2 = arith.constant 0 : index
    %c0_3 = arith.constant 0 : index
    %4 = vector.load %arg3[%c0_2, %c0_3] : memref<128x128xbf16, #tpu.memory_space<vmem>>, vector<128x128xbf16>
    %c0_4 = arith.constant 0 : index
    %c0_5 = arith.constant 0 : index
    %5 = vector.load %arg4[%c0_4, %c0_5] : memref<128x256xbf16, #tpu.memory_space<vmem>>, vector<128x256xbf16>
    %cst = arith.constant dense<0.000000e+00> : vector<128x256xf32>
    %6 = tpu.matmul %4, %5, %cst {dimension_numbers = #tpu.dot_dimension_numbers<[1], [0], [0], [1], [0, 0, 1, 1], [], []>} : vector<128x128xbf16>, vector<128x256xbf16>, vector<128x256xf32> -> vector<128x256xf32>
    %7 = arith.addf %3, %6 : vector<128x256xf32>
    %c0_6 = arith.constant 0 : index
    %c0_7 = arith.constant 0 : index
    %8 = vector.load %arg7[%c0_6, %c0_7] : memref<128x256xf32, #tpu.memory_space<vmem>>, vector<128x256xf32>
    tpu.vector_store %arg7[%c0_6, %c0_7], %7 {strides = array<i32>} : memref<128x256xf32, #tpu.memory_space<vmem>>, vector<128x256xf32>,
    %c0_i32_8 = arith.constant 0 : i32
    %9 = arith.cmpi eq, %arg2, %c0_i32_8 : i32
    %10 = arith.extui %9 : i1 to i32
    %c0_i32_9 = arith.constant 0 : i32
    %11 = arith.cmpi ne, %10, %c0_i32_9 : i32
    scf.if %11 {
      %c0_10 = arith.constant 0 : index
      %c0_11 = arith.constant 0 : index
      %12 = vector.load %arg7[%c0_10, %c0_11] : memref<128x256xf32, #tpu.memory_space<vmem>>, vector<128x256xf32>
      %c0_12 = arith.constant 0 : index
      %c0_13 = arith.constant 0 : index
      %13 = vector.load %arg5[%c0_12, %c0_13] : memref<1x256xf32, #tpu.memory_space<vmem>>, vector<1x256xf32>
      %14 = vector.broadcast %13 : vector<1x256xf32> to vector<128x256xf32>
      %15 = arith.addf %12, %14 : vector<128x256xf32>
      %c0_14 = arith.constant 0 : index
      %c0_15 = arith.constant 0 : index
      %16 = vector.load %arg6[%c0_14, %c0_15] : memref<128x256xf32, #tpu.memory_space<vmem>>, vector<128x256xf32>
      tpu.vector_store %arg6[%c0_14, %c0_15], %15 {strides = array<i32>} : memref<128x256xf32, #tpu.memory_space<vmem>>, vector<128x256xf32>,
    } else {
    }
    return
  }
  func.func @transform_0(%arg0: i32, %arg1: i32, %arg2: i32) -> (i32, i32) {
    %c0_i32 = arith.constant 0 : i32
    return %arg0, %arg2 : i32, i32
  }
  func.func @transform_1(%arg0: i32, %arg1: i32, %arg2: i32) -> (i32, i32) {
    %c0_i32 = arith.constant 0 : i32
    return %arg2, %arg1 : i32, i32
  }
  func.func @transform_2(%arg0: i32, %arg1: i32, %arg2: i32) -> (i32, i32) {
    %c0_i32 = arith.constant 0 : i32
    %c0_i32_0 = arith.constant 0 : i32
    return %c0_i32, %arg1 : i32, i32
  }
  func.func @transform_3(%arg0: i32, %arg1: i32, %arg2: i32) -> (i32, i32) {
    %c0_i32 = arith.constant 0 : i32
    return %arg0, %arg1 : i32, i32
  }
}

module attributes {stable_mosaic.version = 11 : i64} {
  func.func @_matmul_bias_kernel(%arg0: i32, %arg1: i32, %arg2: i32, %arg3: memref<128x128xbf16, #tpu.memory_space<vmem>>, %arg4: memref<128x128xbf16, #tpu.memory_space<vmem>>, %arg5: memref<1x128xf32, #tpu.memory_space<vmem>>, %arg6: memref<128x128xf32, #tpu.memory_space<vmem>>, %arg7: memref<128x128xf32, #tpu.memory_space<vmem>>) attributes {dimension_semantics = [#tpu.dimension_semantics<parallel>, #tpu.dimension_semantics<parallel>, #tpu.dimension_semantics<arbitrary>], iteration_bounds = array<i64: 1, 1, 1>, scalar_prefetch = 0 : i64, scratch_operands = 1 : i64, tpu.core_type = #tpu.core_type<tc>, window_params = [{transform_indices = @transform_0, window_bounds = array<i64: 128, 128>}, {transform_indices = @transform_1, window_bounds = array<i64: 128, 128>}, {transform_indices = @transform_2, window_bounds = array<i64: 1, 128>}, {transform_indices = @transform_3, window_bounds = array<i64: 128, 128>}]} {
    %c0_i32 = arith.constant 0 : i32
    %0 = arith.cmpi eq, %arg2, %c0_i32 : i32
    %1 = arith.extui %0 : i1 to i32
    %c0_i32_0 = arith.constant 0 : i32
    %2 = arith.cmpi ne, %1, %c0_i32_0 : i32
    scf.if %2 {
      %cst_10 = arith.constant 0.000000e+00 : f32
      %12 = vector.broadcast %cst_10 : f32 to vector<128x128xf32>
      %c0_11 = arith.constant 0 : index
      %c0_12 = arith.constant 0 : index
      %13 = vector.load %arg7[%c0_11, %c0_12] : memref<128x128xf32, #tpu.memory_space<vmem>>, vector<128x128xf32>
      tpu.vector_store %arg7[%c0_11, %c0_12], %12 {strides = array<i32>} : memref<128x128xf32, #tpu.memory_space<vmem>>, vector<128x128xf32>,
    } else {
    }
    %c0 = arith.constant 0 : index
    %c0_1 = arith.constant 0 : index
    %3 = vector.load %arg7[%c0, %c0_1] : memref<128x128xf32, #tpu.memory_space<vmem>>, vector<128x128xf32>
    %c0_2 = arith.constant 0 : index
    %c0_3 = arith.constant 0 : index
    %4 = vector.load %arg3[%c0_2, %c0_3] : memref<128x128xbf16, #tpu.memory_space<vmem>>, vector<128x128xbf16>
    %c0_4 = arith.constant 0 : index
    %c0_5 = arith.constant 0 : index
    %5 = vector.load %arg4[%c0_4, %c0_5] : memref<128x128xbf16, #tpu.memory_space<vmem>>, vector<128x128xbf16>
    %cst = arith.constant dense<0.000000e+00> : vector<128x128xf32>
    %6 = tpu.matmul %4, %5, %cst {dimension_numbers = #tpu.dot_dimension_numbers<[1], [0], [0], [1], [0, 0, 1, 1], [], []>} : vector<128x128xbf16>, vector<128x128xbf16>, vector<128x128xf32> -> vector<128x128xf32>
    %7 = arith.addf %3, %6 : vector<128x128xf32>
    %c0_6 = arith.constant 0 : index
    %c0_7 = arith.constant 0 : index
    %8 = vector.load %arg7[%c0_6, %c0_7] : memref<128x128xf32, #tpu.memory_space<vmem>>, vector<128x128xf32>
    tpu.vector_store %arg7[%c0_6, %c0_7], %7 {strides = array<i32>} : memref<128x128xf32, #tpu.memory_space<vmem>>, vector<128x128xf32>,
    %c0_i32_8 = arith.constant 0 : i32
    %9 = arith.cmpi eq, %arg2, %c0_i32_8 : i32
    %10 = arith.extui %9 : i1 to i32
    %c0_i32_9 = arith.constant 0 : i32
    %11 = arith.cmpi ne, %10, %c0_i32_9 : i32
    scf.if %11 {
      %c0_10 = arith.constant 0 : index
      %c0_11 = arith.constant 0 : index
      %12 = vector.load %arg7[%c0_10, %c0_11] : memref<128x128xf32, #tpu.memory_space<vmem>>, vector<128x128xf32>
      %c0_12 = arith.constant 0 : index
      %c0_13 = arith.constant 0 : index
      %13 = vector.load %arg5[%c0_12, %c0_13] : memref<1x128xf32, #tpu.memory_space<vmem>>, vector<1x128xf32>
      %14 = vector.broadcast %13 : vector<1x128xf32> to vector<128x128xf32>
      %15 = arith.addf %12, %14 : vector<128x128xf32>
      %c0_14 = arith.constant 0 : index
      %c0_15 = arith.constant 0 : index
      %16 = vector.load %arg6[%c0_14, %c0_15] : memref<128x128xf32, #tpu.memory_space<vmem>>, vector<128x128xf32>
      tpu.vector_store %arg6[%c0_14, %c0_15], %15 {strides = array<i32>} : memref<128x128xf32, #tpu.memory_space<vmem>>, vector<128x128xf32>,
    } else {
    }
    return
  }
  func.func @transform_0(%arg0: i32, %arg1: i32, %arg2: i32) -> (i32, i32) {
    %c0_i32 = arith.constant 0 : i32
    return %arg0, %arg2 : i32, i32
  }
  func.func @transform_1(%arg0: i32, %arg1: i32, %arg2: i32) -> (i32, i32) {
    %c0_i32 = arith.constant 0 : i32
    return %arg2, %arg1 : i32, i32
  }
  func.func @transform_2(%arg0: i32, %arg1: i32, %arg2: i32) -> (i32, i32) {
    %c0_i32 = arith.constant 0 : i32
    %c0_i32_0 = arith.constant 0 : i32
    return %c0_i32, %arg1 : i32, i32
  }
  func.func @transform_3(%arg0: i32, %arg1: i32, %arg2: i32) -> (i32, i32) {
    %c0_i32 = arith.constant 0 : i32
    return %arg0, %arg1 : i32, i32
  }
}

</mosaic_0001>

<bundles_post_ra>
// kernel: gcn_forward.6
= control target key start
LH: loop header
LB: loop body
LE: loop exit
PB: predicated region body
PF: predicated region fallthrough
CT: control target
= control target key end

     0   :  { %s804_s1 = inlined_call_operand.vmem [shape: bf16[256,128], index: 1, kind: input, shape index: {}]   ;;  %s805_s0 = inlined_call_operand.vmem [shape: bf16[128,256], index: 0, kind: input, shape index: {}]   ;;  %s806_s2 = inlined_call_operand.vmem [shape: f32[1,128], index: 2, kind: input, shape index: {}]   ;;  %s807_s3 = inlined_call_operand.vmem [shape: f32[128,128], index: 3, kind: output, shape index: {}]  }
   0x1   :  { %v579_v0 = vld [vmem:[%s804_s1 + $0x78] sm:$0xff]   ;;  %v581_v2 = vld [vmem:[%s804_s1 + $0x70] sm:$0xff]   ;;  %v583_v4 = vld [vmem:[%s804_s1 + $0x68] sm:$0xff]  }
   0x2   :  { %v580_v1 = vld [vmem:[%s804_s1 + $0x38] sm:$0xff]   ;;  %499 = vmatprep.subr.bf16.mxu0 %v579_v0  ;;  %563 = vmatprep.subr.bf16.mxu1 %v579_v0  ;;  %v582_v3 = vld [vmem:[%s804_s1 + $0x30] sm:$0xff]   ;;  %v584_v5 = vld [vmem:[%s804_s1 + $0x28] sm:$0xff]  }
   0x3   :  { %500 = vmatpush3.bf16.msra.mxu0 %v580_v1  ;;  %571 = vmatpush3.bf16.msra.mxu1 %v580_v1  ;;  %v585_v6 = vld [vmem:[%s804_s1 + $0x60] sm:$0xff]   ;;  %v587_v8 = vld [vmem:[%s804_s1 + $0x58] sm:$0xff]   ;;  %v589_v10 = vld [vmem:[%s804_s1 + $0x50] sm:$0xff]  }
   0x4   :  { %501 = vmatprep.subr.bf16.mxu0 %v581_v2  ;;  %564 = vmatprep.subr.bf16.mxu1 %v581_v2  ;;  %v586_v7 = vld [vmem:[%s804_s1 + $0x20] sm:$0xff]   ;;  %v588_v9 = vld [vmem:[%s804_s1 + $0x18] sm:$0xff]   ;;  %v590_v13 = vld [vmem:[%s804_s1 + $0x10] sm:$0xff]  }
   0x5   :  { %v597_v11 = vld [vmem:[%s805_s0 + $0x4] ss:$8 sps:$4 sm:$0xff]   ;;  %v595_v18 = vld [vmem:[%s805_s0] ss:$8 sps:$4 sm:$0xff]   ;;  %v601_v20 = vld [vmem:[%s805_s0 + $0x14] ss:$8 sps:$4 sm:$0xff]  }
   0x6   :  { %v600_v12 = vld [vmem:[%s805_s0 + $0x44] ss:$8 sps:$4 sm:$0xff]   ;;  %307 = vmatprep.mubr.bf16.mxu0 %v597_v11  ;;  %v598_v19 = vld [vmem:[%s805_s0 + $0x40] ss:$8 sps:$4 sm:$0xff]   ;;  %v603_v21 = vld [vmem:[%s805_s0 + $0x54] ss:$8 sps:$4 sm:$0xff]  }
   0x7   :  { %502 = vmatpush3.bf16.msra.mxu0 %v582_v3  ;;  %572 = vmatpush3.bf16.msra.mxu1 %v582_v3  ;;  %v591_v14 = vld [vmem:[%s804_s1 + $0x48] sm:$0xff]   ;;  %v593_v16 = vld [vmem:[%s804_s1 + $0x40] sm:$0xff]   ;;  %v605_v22 = vld [vmem:[%s805_s0 + $0x10] ss:$8 sps:$4 sm:$0xff]  }
   0x8   :  { %503 = vmatprep.subr.bf16.mxu0 %v583_v4  ;;  %565 = vmatprep.subr.bf16.mxu1 %v583_v4  ;;  %v592_v15 = vld [vmem:[%s804_s1 + $0x8] sm:$0xff]   ;;  %v594_v17 = vld [vmem:[%s804_s1] sm:$0xff]   ;;  %v606_v23 = vld [vmem:[%s805_s0 + $0x50] ss:$8 sps:$4 sm:$0xff]  }
   0x9   :  { %339 = vmatprep.mubr.bf16.mxu1 %v600_v12  ;;  %v607_v24 = vld [vmem:[%s805_s0 + $0x24] ss:$8 sps:$4 sm:$0xff]   ;;  %v611_v26 = vld [vmem:[%s805_s0 + $0x20] ss:$8 sps:$4 sm:$0xff]   ;;  %v613_v28 = vld [vmem:[%s805_s0 + $0x34] ss:$8 sps:$4 sm:$0xff]  }
   0xa   :  { %v609_v25 = vld [vmem:[%s805_s0 + $0x64] ss:$8 sps:$4 sm:$0xff]   ;;  %v612_v27 = vld [vmem:[%s805_s0 + $0x60] ss:$8 sps:$4 sm:$0xff]   ;;  %v615_v29 = vld [vmem:[%s805_s0 + $0x74] ss:$8 sps:$4 sm:$0xff]  }
   0xb   :  { %504 = vmatpush3.bf16.msra.mxu0 %v584_v5  ;;  %573 = vmatpush3.bf16.msra.mxu1 %v584_v5  ;;  %v617_v30 = vld [vmem:[%s805_s0 + $0x30] ss:$8 sps:$4 sm:$0xff]   ;;  %v738_v35 = vld [vmem:[%s806_s2] ss:$0 sm:$0xff] }
   0xc   :  { %505 = vmatprep.subr.bf16.mxu0 %v585_v6  ;;  %566 = vmatprep.subr.bf16.mxu1 %v585_v6  ;;  %v618_v31 = vld [vmem:[%s805_s0 + $0x70] ss:$8 sps:$4 sm:$0xff]  }
   0xf   :  { %506 = vmatpush3.bf16.msra.mxu0 %v586_v7  ;;  %574 = vmatpush3.bf16.msra.mxu1 %v586_v7 }
  0x10   :  { %507 = vmatprep.subr.bf16.mxu0 %v587_v8  ;;  %567 = vmatprep.subr.bf16.mxu1 %v587_v8 }
  0x13   :  { %508 = vmatpush3.bf16.msra.mxu0 %v588_v9  ;;  %575 = vmatpush3.bf16.msra.mxu1 %v588_v9 }
  0x14   :  { %509 = vmatprep.subr.bf16.mxu0 %v589_v10  ;;  %568 = vmatprep.subr.bf16.mxu1 %v589_v10 }
  0x17   :  { %510 = vmatpush3.bf16.msra.mxu0 %v590_v13  ;;  %576 = vmatpush3.bf16.msra.mxu1 %v590_v13 }
  0x18   :  { %511 = vmatprep.subr.bf16.mxu0 %v591_v14  ;;  %569 = vmatprep.subr.bf16.mxu1 %v591_v14 }
  0x1b   :  { %512 = vmatpush3.bf16.msra.mxu0 %v592_v15  ;;  %577 = vmatpush3.bf16.msra.mxu1 %v592_v15 }
  0x1c   :  { %513 = vmatprep.subr.bf16.mxu0 %v593_v16  ;;  %570 = vmatprep.subr.bf16.mxu1 %v593_v16 }
  0x1f   :  { %514 = vmatpush3.bf16.msra.mxu0 %v594_v17  ;;  %578 = vmatpush3.bf16.msra.mxu1 %v594_v17 }
  0x22   :  { %308 = vmatmul.mubr.bf16.vlgmr.msra.gmra.mxu0 %v595_v18  ;;  %340 = vmatmul.mubr.bf16.vlgmr.msra.gmra.mxu1 %v598_v19 }
  0x23   :  { %315 = vmatprep.mubr.bf16.mxu0 %v601_v20  ;;  %347 = vmatprep.mubr.bf16.mxu1 %v603_v21 }
  0x2a   :  { %316 = vmatmul.mubr.bf16.gmra.mxu0 %v605_v22  ;;  %348 = vmatmul.mubr.bf16.gmra.mxu1 %v606_v23 }
  0x2b   :  { %323 = vmatprep.mubr.bf16.mxu0 %v607_v24  ;;  %355 = vmatprep.mubr.bf16.mxu1 %v609_v25 }
  0x32   :  { %324 = vmatmul.mubr.bf16.gmra.mxu0 %v611_v26  ;;  %356 = vmatmul.mubr.bf16.gmra.mxu1 %v612_v27 }
  0x33   :  { %331 = vmatprep.mubr.bf16.mxu0 %v613_v28  ;;  %363 = vmatprep.mubr.bf16.mxu1 %v615_v29 }
  0x3a   :  { %332 = vmatmul.mubr.bf16.gmra.mxu0 %v617_v30  ;;  %364 = vmatmul.mubr.bf16.gmra.mxu1 %v618_v31 }
  0xe2   :  { %v515_v32 = vpop.f32.mrf.mxu0  ;;  %v539_v33 = vpop.f32.mrf.mxu1 }
  0xe4   :  { %v516_v34 = vpop.f32.mrf.mxu0  ;;  %v540_v36 = vpop.f32.mrf.mxu1 }
  0xe5   :  { %v517_v37 = vadd.f32 %v516_v34, %v515_v32  ;;  %v541_v38 = vadd.f32 %v540_v36, %v539_v33 }
  0xe6   :  { %v518_v39 = vpop.f32.mrf.mxu0  ;;  %v542_v40 = vpop.f32.mrf.mxu1 }
  0xe7   :  { %v430_v41 = vadd.f32 %v517_v37, %v738_v35  ;;  %v438_v42 = vadd.f32 %v541_v38, %v738_v35 }
  0xe8   :  { %v519_v43 = vpop.f32.mrf.mxu0  ;;  %v543_v44 = vpop.f32.mrf.mxu1 }
  0xe9   :  { %446 = vst [vmem:[%s807_s3] sm:$0xff] %v430_v41  ;;  %454 = vst [vmem:[%s807_s3 + $0x40] sm:$0xff] %v438_v42  ;;  %v520_v45 = vadd.f32 %v519_v43, %v518_v39  ;;  %v544_v46 = vadd.f32 %v543_v44, %v542_v40 }
  0xea   :  { %v521_v47 = vpop.f32.mrf.mxu0  ;;  %v545_v48 = vpop.f32.mrf.mxu1 }
  0xeb   :  { %v431_v49 = vadd.f32 %v520_v45, %v738_v35  ;;  %v439_v50 = vadd.f32 %v544_v46, %v738_v35 }
  0xec   :  { %v522_v51 = vpop.f32.mrf.mxu0  ;;  %v546_v52 = vpop.f32.mrf.mxu1 }
  0xed   :  { %447 = vst [vmem:[%s807_s3 + $0x8] sm:$0xff] %v431_v49  ;;  %455 = vst [vmem:[%s807_s3 + $0x48] sm:$0xff] %v439_v50  ;;  %v523_v53 = vadd.f32 %v522_v51, %v521_v47  ;;  %v547_v54 = vadd.f32 %v546_v52, %v545_v48 }
  0xee   :  { %v524_v55 = vpop.f32.mrf.mxu0  ;;  %v548_v56 = vpop.f32.mrf.mxu1 }
  0xef   :  { %v432_v57 = vadd.f32 %v523_v53, %v738_v35  ;;  %v440_v58 = vadd.f32 %v547_v54, %v738_v35 }
  0xf0   :  { %v525_v59 = vpop.f32.mrf.mxu0  ;;  %v549_v60 = vpop.f32.mrf.mxu1 }
  0xf1   :  { %448 = vst [vmem:[%s807_s3 + $0x10] sm:$0xff] %v432_v57  ;;  %456 = vst [vmem:[%s807_s3 + $0x50] sm:$0xff] %v440_v58  ;;  %v526_v61 = vadd.f32 %v525_v59, %v524_v55  ;;  %v550_v62 = vadd.f32 %v549_v60, %v548_v56 }
  0xf2   :  { %v527_v63 = vpop.f32.mrf.mxu0  ;;  %v551_v0 = vpop.f32.mrf.mxu1 }
  0xf3   :  { %v433_v1 = vadd.f32 %v526_v61, %v738_v35  ;;  %v441_v2 = vadd.f32 %v550_v62, %v738_v35 }
  0xf4   :  { %v528_v3 = vpop.f32.mrf.mxu0  ;;  %v552_v4 = vpop.f32.mrf.mxu1 }
  0xf5   :  { %449 = vst [vmem:[%s807_s3 + $0x18] sm:$0xff] %v433_v1  ;;  %457 = vst [vmem:[%s807_s3 + $0x58] sm:$0xff] %v441_v2  ;;  %v529_v5 = vadd.f32 %v528_v3, %v527_v63  ;;  %v553_v6 = vadd.f32 %v552_v4, %v551_v0 }
  0xf6   :  { %v530_v7 = vpop.f32.mrf.mxu0  ;;  %v554_v8 = vpop.f32.mrf.mxu1 }
  0xf7   :  { %v434_v9 = vadd.f32 %v529_v5, %v738_v35  ;;  %v442_v10 = vadd.f32 %v553_v6, %v738_v35 }
  0xf8   :  { %v531_v11 = vpop.f32.mrf.mxu0  ;;  %v555_v12 = vpop.f32.mrf.mxu1 }
  0xf9   :  { %450 = vst [vmem:[%s807_s3 + $0x20] sm:$0xff] %v434_v9  ;;  %458 = vst [vmem:[%s807_s3 + $0x60] sm:$0xff] %v442_v10  ;;  %v532_v13 = vadd.f32 %v531_v11, %v530_v7  ;;  %v556_v14 = vadd.f32 %v555_v12, %v554_v8 }
  0xfa   :  { %v533_v15 = vpop.f32.mrf.mxu0  ;;  %v557_v16 = vpop.f32.mrf.mxu1 }
  0xfb   :  { %v435_v17 = vadd.f32 %v532_v13, %v738_v35  ;;  %v443_v18 = vadd.f32 %v556_v14, %v738_v35 }
  0xfc   :  { %v534_v19 = vpop.f32.mrf.mxu0  ;;  %v558_v20 = vpop.f32.mrf.mxu1 }
  0xfd   :  { %451 = vst [vmem:[%s807_s3 + $0x28] sm:$0xff] %v435_v17  ;;  %459 = vst [vmem:[%s807_s3 + $0x68] sm:$0xff] %v443_v18  ;;  %v535_v21 = vadd.f32 %v534_v19, %v533_v15  ;;  %v559_v22 = vadd.f32 %v558_v20, %v557_v16 }
  0xfe   :  { %v536_v23 = vpop.f32.mrf.mxu0  ;;  %v560_v24 = vpop.f32.mrf.mxu1 }
  0xff   :  { %v436_v25 = vadd.f32 %v535_v21, %v738_v35  ;;  %v444_v26 = vadd.f32 %v559_v22, %v738_v35 }
 0x100   :  { %v537_v27 = vpop.f32.mrf.mxu0  ;;  %v561_v28 = vpop.f32.mrf.mxu1 }
 0x101   :  { %452 = vst [vmem:[%s807_s3 + $0x30] sm:$0xff] %v436_v25  ;;  %460 = vst [vmem:[%s807_s3 + $0x70] sm:$0xff] %v444_v26  ;;  %v538_v29 = vadd.f32 %v537_v27, %v536_v23  ;;  %v562_v30 = vadd.f32 %v561_v28, %v560_v24 }
 0x103   :  { %v437_v31 = vadd.f32 %v538_v29, %v738_v35  ;;  %v445_v32 = vadd.f32 %v562_v30, %v738_v35 }
 0x105   :  { %453 = vst [vmem:[%s807_s3 + $0x38] sm:$0xff] %v437_v31  ;;  %461 = vst [vmem:[%s807_s3 + $0x78] sm:$0xff] %v445_v32 }

// kernel: gcn_forward.7
= control target key start
LH: loop header
LB: loop body
LE: loop exit
PB: predicated region body
PF: predicated region fallthrough
CT: control target
= control target key end

     0   :  { %s586_s1 = inlined_call_operand.vmem [shape: bf16[128,128], index: 1, kind: input, shape index: {}]   ;;  %s587_s0 = inlined_call_operand.vmem [shape: bf16[128,128], index: 0, kind: input, shape index: {}]   ;;  %s588_s2 = inlined_call_operand.vmem [shape: f32[1,128], index: 2, kind: input, shape index: {}]   ;;  %s589_s3 = inlined_call_operand.vmem [shape: f32[128,128], index: 3, kind: output, shape index: {}]  }
   0x1   :  { %v451_v0 = vld [vmem:[%s586_s1 + $0x38] sm:$0xff]   ;;  %v452_v1 = vld [vmem:[%s586_s1 + $0x30] sm:$0xff]   ;;  %v453_v2 = vld [vmem:[%s586_s1 + $0x28] sm:$0xff]  }
   0x2   :  { %403 = vmatprep.subr.bf16.mxu0 %v451_v0  ;;  %435 = vmatprep.subr.bf16.mxu1 %v451_v0  ;;  %v454_v3 = vld [vmem:[%s586_s1 + $0x20] sm:$0xff]   ;;  %v455_v6 = vld [vmem:[%s586_s1 + $0x18] sm:$0xff]   ;;  %v456_v7 = vld [vmem:[%s586_s1 + $0x10] sm:$0xff]  }
   0x3   :  { %404 = vmatpush3.bf16.msra.mxu0 %v451_v0  ;;  %443 = vmatpush3.bf16.msra.mxu1 %v451_v0  ;;  %v459_v4 = vld [vmem:[%s587_s0] sm:$0xff]   ;;  %v457_v8 = vld [vmem:[%s586_s1 + $0x8] sm:$0xff]   ;;  %v463_v12 = vld [vmem:[%s587_s0 + $0x10] sm:$0xff]  }
   0x4   :  { %405 = vmatprep.subr.bf16.mxu0 %v452_v1  ;;  %436 = vmatprep.subr.bf16.mxu1 %v452_v1  ;;  %v460_v5 = vld [vmem:[%s587_s0 + $0x20] sm:$0xff]   ;;  %v461_v10 = vld [vmem:[%s587_s0 + $0x8] sm:$0xff]   ;;  %v464_v13 = vld [vmem:[%s587_s0 + $0x30] sm:$0xff]  }
   0x5   :  { %419 = vmatprep.mubr.bf16.mxu0 %v459_v4  ;;  %427 = vmatprep.mubr.bf16.mxu1 %v460_v5  ;;  %v458_v9 = vld [vmem:[%s586_s1] sm:$0xff]   ;;  %v462_v11 = vld [vmem:[%s587_s0 + $0x28] sm:$0xff]   ;;  %v465_v14 = vld [vmem:[%s587_s0 + $0x18] sm:$0xff]  }
   0x6   :  { %v466_v15 = vld [vmem:[%s587_s0 + $0x38] sm:$0xff]   ;;  %v386_v16 = vld [vmem:[%s588_s2] ss:$0 sm:$0xff] }
   0x7   :  { %406 = vmatpush3.bf16.msra.mxu0 %v452_v1  ;;  %444 = vmatpush3.bf16.msra.mxu1 %v452_v1 }
   0x8   :  { %407 = vmatprep.subr.bf16.mxu0 %v453_v2  ;;  %437 = vmatprep.subr.bf16.mxu1 %v453_v2 }
   0xb   :  { %408 = vmatpush3.bf16.msra.mxu0 %v453_v2  ;;  %445 = vmatpush3.bf16.msra.mxu1 %v453_v2 }
   0xc   :  { %409 = vmatprep.subr.bf16.mxu0 %v454_v3  ;;  %438 = vmatprep.subr.bf16.mxu1 %v454_v3 }
   0xf   :  { %410 = vmatpush3.bf16.msra.mxu0 %v454_v3  ;;  %446 = vmatpush3.bf16.msra.mxu1 %v454_v3 }
  0x10   :  { %411 = vmatprep.subr.bf16.mxu0 %v455_v6  ;;  %439 = vmatprep.subr.bf16.mxu1 %v455_v6 }
  0x13   :  { %412 = vmatpush3.bf16.msra.mxu0 %v455_v6  ;;  %447 = vmatpush3.bf16.msra.mxu1 %v455_v6 }
  0x14   :  { %413 = vmatprep.subr.bf16.mxu0 %v456_v7  ;;  %440 = vmatprep.subr.bf16.mxu1 %v456_v7 }
  0x17   :  { %414 = vmatpush3.bf16.msra.mxu0 %v456_v7  ;;  %448 = vmatpush3.bf16.msra.mxu1 %v456_v7 }
  0x18   :  { %415 = vmatprep.subr.bf16.mxu0 %v457_v8  ;;  %441 = vmatprep.subr.bf16.mxu1 %v457_v8 }
  0x1b   :  { %416 = vmatpush3.bf16.msra.mxu0 %v457_v8  ;;  %449 = vmatpush3.bf16.msra.mxu1 %v457_v8 }
  0x1c   :  { %417 = vmatprep.subr.bf16.mxu0 %v458_v9  ;;  %442 = vmatprep.subr.bf16.mxu1 %v458_v9 }
  0x1f   :  { %418 = vmatpush3.bf16.msra.mxu0 %v458_v9  ;;  %450 = vmatpush3.bf16.msra.mxu1 %v458_v9 }
  0x22   :  { %420 = vmatmul.mubr.bf16.vlgmr.msra.gmra.mxu0 %v461_v10  ;;  %428 = vmatmul.mubr.bf16.vlgmr.msra.gmra.mxu1 %v462_v11 }
  0x23   :  { %423 = vmatprep.mubr.bf16.mxu0 %v463_v12  ;;  %431 = vmatprep.mubr.bf16.mxu1 %v464_v13 }
  0x2a   :  { %424 = vmatmul.mubr.bf16.gmra.mxu0 %v465_v14  ;;  %432 = vmatmul.mubr.bf16.gmra.mxu1 %v466_v15 }
  0xe2   :  { %v421_v17 = vpop.f32.mrf.mxu0  ;;  %v429_v18 = vpop.f32.mrf.mxu1 }
  0xe3   :  { %v336_v19 = vadd.f32 %v421_v17, %v386_v16  ;;  %v344_v20 = vadd.f32 %v429_v18, %v386_v16 }
  0xe4   :  { %v213_v21 = vpop.f32.mrf.mxu0  ;;  %v245_v22 = vpop.f32.mrf.mxu1 }
  0xe5   :  { %352 = vst [vmem:[%s589_s3 + $0x10] sm:$0xff] %v336_v19  ;;  %360 = vst [vmem:[%s589_s3 + $0x50] sm:$0xff] %v344_v20  ;;  %v334_v23 = vadd.f32 %v386_v16, %v213_v21  ;;  %v342_v24 = vadd.f32 %v386_v16, %v245_v22 }
  0xe6   :  { %v422_v25 = vpop.f32.mrf.mxu0  ;;  %v430_v26 = vpop.f32.mrf.mxu1 }
  0xe7   :  { %350 = vst [vmem:[%s589_s3] sm:$0xff] %v334_v23  ;;  %358 = vst [vmem:[%s589_s3 + $0x40] sm:$0xff] %v342_v24  ;;  %v337_v27 = vadd.f32 %v422_v25, %v386_v16  ;;  %v345_v28 = vadd.f32 %v430_v26, %v386_v16 }
  0xe8   :  { %v216_v29 = vpop.f32.mrf.mxu0  ;;  %v248_v30 = vpop.f32.mrf.mxu1 }
  0xe9   :  { %353 = vst [vmem:[%s589_s3 + $0x18] sm:$0xff] %v337_v27  ;;  %361 = vst [vmem:[%s589_s3 + $0x58] sm:$0xff] %v345_v28  ;;  %v335_v31 = vadd.f32 %v386_v16, %v216_v29  ;;  %v343_v32 = vadd.f32 %v386_v16, %v248_v30 }
  0xea   :  { %v425_v33 = vpop.f32.mrf.mxu0  ;;  %v433_v34 = vpop.f32.mrf.mxu1 }
  0xeb   :  { %351 = vst [vmem:[%s589_s3 + $0x8] sm:$0xff] %v335_v31  ;;  %359 = vst [vmem:[%s589_s3 + $0x48] sm:$0xff] %v343_v32  ;;  %v340_v35 = vadd.f32 %v425_v33, %v386_v16  ;;  %v348_v36 = vadd.f32 %v433_v34, %v386_v16 }
  0xec   :  { %v229_v37 = vpop.f32.mrf.mxu0  ;;  %v261_v38 = vpop.f32.mrf.mxu1 }
  0xed   :  { %356 = vst [vmem:[%s589_s3 + $0x30] sm:$0xff] %v340_v35  ;;  %364 = vst [vmem:[%s589_s3 + $0x70] sm:$0xff] %v348_v36  ;;  %v338_v39 = vadd.f32 %v386_v16, %v229_v37  ;;  %v346_v40 = vadd.f32 %v386_v16, %v261_v38 }
  0xee   :  { %v426_v41 = vpop.f32.mrf.mxu0  ;;  %v434_v42 = vpop.f32.mrf.mxu1 }
  0xef   :  { %354 = vst [vmem:[%s589_s3 + $0x20] sm:$0xff] %v338_v39  ;;  %362 = vst [vmem:[%s589_s3 + $0x60] sm:$0xff] %v346_v40  ;;  %v341_v43 = vadd.f32 %v426_v41, %v386_v16  ;;  %v349_v44 = vadd.f32 %v434_v42, %v386_v16 }
  0xf0   :  { %v232_v45 = vpop.f32.mrf.mxu0  ;;  %v264_v46 = vpop.f32.mrf.mxu1 }
  0xf1   :  { %357 = vst [vmem:[%s589_s3 + $0x38] sm:$0xff] %v341_v43  ;;  %365 = vst [vmem:[%s589_s3 + $0x78] sm:$0xff] %v349_v44  ;;  %v339_v47 = vadd.f32 %v386_v16, %v232_v45  ;;  %v347_v48 = vadd.f32 %v386_v16, %v264_v46 }
  0xf3   :  { %355 = vst [vmem:[%s589_s3 + $0x28] sm:$0xff] %v339_v47  ;;  %363 = vst [vmem:[%s589_s3 + $0x68] sm:$0xff] %v347_v48 }

// kernel: gcn_forward.4
= control target key start
LH: loop header
LB: loop body
LE: loop exit
PB: predicated region body
PF: predicated region fallthrough
CT: control target
= control target key end

     0   :  { %v608_v1 = vmov 0   ;;  %v457_v25 = vlaneseq  ;;  %s844_s1 = inlined_call_operand.vmem [shape: bf16[128,256], index: 1, kind: input, shape index: {}]   ;;  %s845_s0 = inlined_call_operand.vmem [shape: bf16[128,128], index: 0, kind: input, shape index: {}]   ;;  %s846_s2 = inlined_call_operand.vmem [shape: f32[1,256], index: 2, kind: input, shape index: {}]   ;;  %s847_s3 = inlined_call_operand.vmem [shape: f32[128,256], index: 3, kind: output, shape index: {}]  }
   0x1   :  { %v576_v0 = vld [vmem:[%s844_s1 + $0x74] ss:$8 sps:$4 sm:$0xff]   ;;  %275 = vmatprep.mubr.bf16.mxu0 %v608_v1  ;;  %315 = vmatprep.mubr.bf16.mxu1 %v608_v1  ;;  %v578_v2 = vld [vmem:[%s844_s1 + $0x70] ss:$8 sps:$4 sm:$0xff]   ;;  %v579_v3 = vld [vmem:[%s844_s1 + $0x64] ss:$8 sps:$4 sm:$0xff]  }
   0x2   :  { %243 = vmatprep.subr.bf16.mxu0 %v576_v0  ;;  %559 = vmatprep.subr.bf16.mxu1 %v576_v0  ;;  %v581_v4 = vld [vmem:[%s844_s1 + $0x60] ss:$8 sps:$4 sm:$0xff]   ;;  %v582_v5 = vld [vmem:[%s844_s1 + $0x54] ss:$8 sps:$4 sm:$0xff]   ;;  %v584_v6 = vld [vmem:[%s844_s1 + $0x50] ss:$8 sps:$4 sm:$0xff]  }
   0x3   :  { %244 = vmatpush1.bf16.msra.mxu0 %v578_v2  ;;  %567 = vmatpush1.bf16.msra.mxu1 %v578_v2  ;;  %v585_v7 = vld [vmem:[%s844_s1 + $0x44] ss:$8 sps:$4 sm:$0xff]   ;;  %v587_v8 = vld [vmem:[%s844_s1 + $0x40] ss:$8 sps:$4 sm:$0xff]   ;;  %v588_v9 = vld [vmem:[%s844_s1 + $0x34] ss:$8 sps:$4 sm:$0xff]  }
   0x4   :  { %245 = vmatprep.subr.bf16.mxu0 %v579_v3  ;;  %560 = vmatprep.subr.bf16.mxu1 %v579_v3  ;;  %v590_v10 = vld [vmem:[%s844_s1 + $0x30] ss:$8 sps:$4 sm:$0xff]   ;;  %v591_v11 = vld [vmem:[%s844_s1 + $0x24] ss:$8 sps:$4 sm:$0xff]   ;;  %v593_v12 = vld [vmem:[%s844_s1 + $0x20] ss:$8 sps:$4 sm:$0xff]  }
   0x5   :  { %v594_v13 = vld [vmem:[%s844_s1 + $0x14] ss:$8 sps:$4 sm:$0xff]   ;;  %v596_v14 = vld [vmem:[%s844_s1 + $0x10] ss:$8 sps:$4 sm:$0xff]   ;;  %v597_v15 = vld [vmem:[%s844_s1 + $0x4] ss:$8 sps:$4 sm:$0xff]  }
   0x6   :  { %v599_v16 = vld [vmem:[%s844_s1] ss:$8 sps:$4 sm:$0xff]   ;;  %v604_v21 = vld [vmem:[%s845_s0 + $0x10] sm:$0xff]   ;;  %v606_v23 = vld [vmem:[%s845_s0 + $0x18] sm:$0xff]   ;;  %v458_v26 = vshrl.u32 %v457_v25, 7 }
   0x7   :  { %246 = vmatpush1.bf16.msra.mxu0 %v581_v4  ;;  %568 = vmatpush1.bf16.msra.mxu1 %v581_v4  ;;  %v600_v17 = vld [vmem:[%s845_s0] sm:$0xff]   ;;  %v602_v19 = vld [vmem:[%s845_s0 + $0x8] sm:$0xff]   ;;  %v605_v22 = vld [vmem:[%s845_s0 + $0x30] sm:$0xff]  }
   0x8   :  { %247 = vmatprep.subr.bf16.mxu0 %v582_v5  ;;  %561 = vmatprep.subr.bf16.mxu1 %v582_v5  ;;  %v601_v18 = vld [vmem:[%s845_s0 + $0x20] sm:$0xff]   ;;  %v603_v20 = vld [vmem:[%s845_s0 + $0x28] sm:$0xff]   ;;  %v607_v24 = vld [vmem:[%s845_s0 + $0x38] sm:$0xff]   ;;  %v459_v27 = vsub.s32 0, %v458_v26  ;;  %v463_v29 = vsub.s32 1, %v458_v26 }
   0x9   :  { %v455_v28 = vld [vmem:[%s846_s2] sm:$0x3] }
   0xa   :  { %v712_v30 = vrot.slane %v455_v28, %v459_v27  ;;  %v714_v31 = vrot.slane %v455_v28, %v463_v29 }
   0xb   :  { %248 = vmatpush1.bf16.msra.mxu0 %v584_v6  ;;  %569 = vmatpush1.bf16.msra.mxu1 %v584_v6 }
   0xc   :  { %249 = vmatprep.subr.bf16.mxu0 %v585_v7  ;;  %562 = vmatprep.subr.bf16.mxu1 %v585_v7 }
   0xf   :  { %250 = vmatpush1.bf16.msra.mxu0 %v587_v8  ;;  %570 = vmatpush1.bf16.msra.mxu1 %v587_v8 }
  0x10   :  { %251 = vmatprep.subr.bf16.mxu0 %v588_v9  ;;  %563 = vmatprep.subr.bf16.mxu1 %v588_v9 }
  0x13   :  { %252 = vmatpush1.bf16.msra.mxu0 %v590_v10  ;;  %571 = vmatpush1.bf16.msra.mxu1 %v590_v10 }
  0x14   :  { %253 = vmatprep.subr.bf16.mxu0 %v591_v11  ;;  %564 = vmatprep.subr.bf16.mxu1 %v591_v11 }
  0x17   :  { %254 = vmatpush1.bf16.msra.mxu0 %v593_v12  ;;  %572 = vmatpush1.bf16.msra.mxu1 %v593_v12 }
  0x18   :  { %255 = vmatprep.subr.bf16.mxu0 %v594_v13  ;;  %565 = vmatprep.subr.bf16.mxu1 %v594_v13 }
  0x1b   :  { %256 = vmatpush1.bf16.msra.mxu0 %v596_v14  ;;  %573 = vmatpush1.bf16.msra.mxu1 %v596_v14 }
  0x1c   :  { %257 = vmatprep.subr.bf16.mxu0 %v597_v15  ;;  %566 = vmatprep.subr.bf16.mxu1 %v597_v15 }
  0x1f   :  { %258 = vmatpush1.bf16.msra.mxu0 %v599_v16  ;;  %574 = vmatpush1.bf16.msra.mxu1 %v599_v16 }
  0x22   :  { %276 = vmatmul.mubr.bf16.vlgmr.msra.gmra.mxu0 %v600_v17  ;;  %316 = vmatmul.mubr.bf16.vlgmr.msra.gmra.mxu1 %v601_v18 }
  0x23   :  { %285 = vmatprep.mubr.bf16.mxu0 %v608_v1  ;;  %325 = vmatprep.mubr.bf16.mxu1 %v608_v1 }
  0x2a   :  { %286 = vmatmul.mubr.bf16.gmra.mxu0 %v602_v19  ;;  %326 = vmatmul.mubr.bf16.gmra.mxu1 %v603_v20 }
  0x2b   :  { %295 = vmatprep.mubr.bf16.mxu0 %v608_v1  ;;  %335 = vmatprep.mubr.bf16.mxu1 %v608_v1 }
  0x32   :  { %296 = vmatmul.mubr.bf16.gmra.mxu0 %v604_v21  ;;  %336 = vmatmul.mubr.bf16.gmra.mxu1 %v605_v22 }
  0x33   :  { %305 = vmatprep.mubr.bf16.mxu0 %v608_v1  ;;  %345 = vmatprep.mubr.bf16.mxu1 %v608_v1 }
  0x3a   :  { %306 = vmatmul.mubr.bf16.gmra.mxu0 %v606_v23  ;;  %346 = vmatmul.mubr.bf16.gmra.mxu1 %v607_v24 }
  0xe2   :  { %v277_v32 = vpop.f32.mrf.mxu0  ;;  %v317_v33 = vpop.f32.mrf.mxu1 }
  0xe3   :  { %v467_v34 = vadd.f32 %v712_v30, %v277_v32  ;;  %v483_v35 = vadd.f32 %v712_v30, %v317_v33 }
  0xe4   :  { %v279_v36 = vpop.f32.mrf.mxu0  ;;  %v319_v37 = vpop.f32.mrf.mxu1 }
  0xe5   :  { %499 = vst [vmem:[%s847_s3] sm:$0xff] %v467_v34  ;;  %515 = vst [vmem:[%s847_s3 + $0x80] sm:$0xff] %v483_v35  ;;  %v468_v38 = vadd.f32 %v714_v31, %v279_v36  ;;  %v484_v39 = vadd.f32 %v714_v31, %v319_v37 }
  0xe6   :  { %v281_v40 = vpop.f32.mrf.mxu0  ;;  %v321_v41 = vpop.f32.mrf.mxu1 }
  0xe7   :  { %500 = vst [vmem:[%s847_s3 + $0x8] sm:$0xff] %v468_v38  ;;  %516 = vst [vmem:[%s847_s3 + $0x88] sm:$0xff] %v484_v39  ;;  %v469_v42 = vadd.f32 %v712_v30, %v281_v40  ;;  %v485_v43 = vadd.f32 %v712_v30, %v321_v41 }
  0xe8   :  { %v283_v44 = vpop.f32.mrf.mxu0  ;;  %v323_v45 = vpop.f32.mrf.mxu1 }
  0xe9   :  { %501 = vst [vmem:[%s847_s3 + $0x10] sm:$0xff] %v469_v42  ;;  %517 = vst [vmem:[%s847_s3 + $0x90] sm:$0xff] %v485_v43  ;;  %v470_v46 = vadd.f32 %v714_v31, %v283_v44  ;;  %v486_v47 = vadd.f32 %v714_v31, %v323_v45 }
  0xea   :  { %v287_v48 = vpop.f32.mrf.mxu0  ;;  %v327_v49 = vpop.f32.mrf.mxu1 }
  0xeb   :  { %502 = vst [vmem:[%s847_s3 + $0x18] sm:$0xff] %v470_v46  ;;  %518 = vst [vmem:[%s847_s3 + $0x98] sm:$0xff] %v486_v47  ;;  %v471_v50 = vadd.f32 %v712_v30, %v287_v48  ;;  %v487_v51 = vadd.f32 %v712_v30, %v327_v49 }
  0xec   :  { %v289_v52 = vpop.f32.mrf.mxu0  ;;  %v329_v53 = vpop.f32.mrf.mxu1 }
  0xed   :  { %503 = vst [vmem:[%s847_s3 + $0x20] sm:$0xff] %v471_v50  ;;  %519 = vst [vmem:[%s847_s3 + $0xa0] sm:$0xff] %v487_v51  ;;  %v472_v54 = vadd.f32 %v714_v31, %v289_v52  ;;  %v488_v55 = vadd.f32 %v714_v31, %v329_v53 }
  0xee   :  { %v291_v56 = vpop.f32.mrf.mxu0  ;;  %v331_v57 = vpop.f32.mrf.mxu1 }
  0xef   :  { %504 = vst [vmem:[%s847_s3 + $0x28] sm:$0xff] %v472_v54  ;;  %520 = vst [vmem:[%s847_s3 + $0xa8] sm:$0xff] %v488_v55  ;;  %v473_v58 = vadd.f32 %v712_v30, %v291_v56  ;;  %v489_v59 = vadd.f32 %v712_v30, %v331_v57 }
  0xf0   :  { %v293_v60 = vpop.f32.mrf.mxu0  ;;  %v333_v61 = vpop.f32.mrf.mxu1 }
  0xf1   :  { %505 = vst [vmem:[%s847_s3 + $0x30] sm:$0xff] %v473_v58  ;;  %521 = vst [vmem:[%s847_s3 + $0xb0] sm:$0xff] %v489_v59  ;;  %v474_v62 = vadd.f32 %v714_v31, %v293_v60  ;;  %v490_v63 = vadd.f32 %v714_v31, %v333_v61 }
  0xf2   :  { %v297_v0 = vpop.f32.mrf.mxu0  ;;  %v337_v1 = vpop.f32.mrf.mxu1 }
  0xf3   :  { %506 = vst [vmem:[%s847_s3 + $0x38] sm:$0xff] %v474_v62  ;;  %522 = vst [vmem:[%s847_s3 + $0xb8] sm:$0xff] %v490_v63  ;;  %v475_v2 = vadd.f32 %v712_v30, %v297_v0  ;;  %v491_v3 = vadd.f32 %v712_v30, %v337_v1 }
  0xf4   :  { %v299_v4 = vpop.f32.mrf.mxu0  ;;  %v339_v5 = vpop.f32.mrf.mxu1 }
  0xf5   :  { %507 = vst [vmem:[%s847_s3 + $0x40] sm:$0xff] %v475_v2  ;;  %523 = vst [vmem:[%s847_s3 + $0xc0] sm:$0xff] %v491_v3  ;;  %v476_v6 = vadd.f32 %v714_v31, %v299_v4  ;;  %v492_v7 = vadd.f32 %v714_v31, %v339_v5 }
  0xf6   :  { %v301_v8 = vpop.f32.mrf.mxu0  ;;  %v341_v9 = vpop.f32.mrf.mxu1 }
  0xf7   :  { %508 = vst [vmem:[%s847_s3 + $0x48] sm:$0xff] %v476_v6  ;;  %524 = vst [vmem:[%s847_s3 + $0xc8] sm:$0xff] %v492_v7  ;;  %v477_v10 = vadd.f32 %v712_v30, %v301_v8  ;;  %v493_v11 = vadd.f32 %v712_v30, %v341_v9 }
  0xf8   :  { %v303_v12 = vpop.f32.mrf.mxu0  ;;  %v343_v13 = vpop.f32.mrf.mxu1 }
  0xf9   :  { %509 = vst [vmem:[%s847_s3 + $0x50] sm:$0xff] %v477_v10  ;;  %525 = vst [vmem:[%s847_s3 + $0xd0] sm:$0xff] %v493_v11  ;;  %v478_v14 = vadd.f32 %v714_v31, %v303_v12  ;;  %v494_v15 = vadd.f32 %v714_v31, %v343_v13 }
  0xfa   :  { %v307_v16 = vpop.f32.mrf.mxu0  ;;  %v347_v17 = vpop.f32.mrf.mxu1 }
  0xfb   :  { %510 = vst [vmem:[%s847_s3 + $0x58] sm:$0xff] %v478_v14  ;;  %526 = vst [vmem:[%s847_s3 + $0xd8] sm:$0xff] %v494_v15  ;;  %v479_v18 = vadd.f32 %v712_v30, %v307_v16  ;;  %v495_v19 = vadd.f32 %v712_v30, %v347_v17 }
  0xfc   :  { %v309_v20 = vpop.f32.mrf.mxu0  ;;  %v349_v21 = vpop.f32.mrf.mxu1 }
  0xfd   :  { %511 = vst [vmem:[%s847_s3 + $0x60] sm:$0xff] %v479_v18  ;;  %527 = vst [vmem:[%s847_s3 + $0xe0] sm:$0xff] %v495_v19  ;;  %v480_v22 = vadd.f32 %v714_v31, %v309_v20  ;;  %v496_v23 = vadd.f32 %v714_v31, %v349_v21 }
  0xfe   :  { %v311_v24 = vpop.f32.mrf.mxu0  ;;  %v351_v25 = vpop.f32.mrf.mxu1 }
  0xff   :  { %512 = vst [vmem:[%s847_s3 + $0x68] sm:$0xff] %v480_v22  ;;  %528 = vst [vmem:[%s847_s3 + $0xe8] sm:$0xff] %v496_v23  ;;  %v481_v26 = vadd.f32 %v712_v30, %v311_v24  ;;  %v497_v27 = vadd.f32 %v712_v30, %v351_v25 }
 0x100   :  { %v313_v28 = vpop.f32.mrf.mxu0  ;;  %v353_v29 = vpop.f32.mrf.mxu1 }
 0x101   :  { %513 = vst [vmem:[%s847_s3 + $0x70] sm:$0xff] %v481_v26  ;;  %529 = vst [vmem:[%s847_s3 + $0xf0] sm:$0xff] %v497_v27  ;;  %v482_v32 = vadd.f32 %v714_v31, %v313_v28  ;;  %v498_v33 = vadd.f32 %v714_v31, %v353_v29 }
 0x103   :  { %514 = vst [vmem:[%s847_s3 + $0x78] sm:$0xff] %v482_v32  ;;  %530 = vst [vmem:[%s847_s3 + $0xf8] sm:$0xff] %v498_v33 }

</bundles_post_ra>
